<compile_context>
chip_gen: v7x
topology: tpu7x:2x2x1
jax: 0.10.0
libtpu: 0.0.40
codegen_flags: <defaults>
</compile_context>

<pallas_src>
import functools

import jax
import jax.numpy as jnp
from jax.experimental import pallas as pl
from jax.experimental.pallas import tpu as pltpu


def _round_up(x, m):
    return ((x + m - 1) // m) * m


# ----------------------------------------------------------------------------
# Shared tiled matmul + bias kernel:  y = x @ W + b
#   - used for the hoisted GRU input projection (gi) and for the FC head
#   - x cast to bf16 in-kernel, f32 accumulation, W pre-transposed by wrapper
# ----------------------------------------------------------------------------
def _matmul_bias_kernel(x_ref, w_ref, b_ref, o_ref):
    acc = jnp.dot(
        x_ref[...].astype(jnp.bfloat16),
        w_ref[...],
        preferred_element_type=jnp.float32,
    )
    o_ref[...] = (acc + b_ref[...]).astype(o_ref.dtype)


def matmul_bias(x2d, w_t, b, out_dtype=jnp.float32, tile_n=256):
    """x2d: (N, K);  w_t: (K, Cout) bf16;  b: (1, Cout) f32  ->  (N, Cout)."""
    N, K = x2d.shape
    Kw, Cout = w_t.shape
    assert Kw == K
    tile_n = min(tile_n, _round_up(N, 8))
    n_pad = _round_up(N, tile_n)
    if n_pad != N:
        x2d = jnp.pad(x2d, ((0, n_pad - N), (0, 0)))
    out = pl.pallas_call(
        _matmul_bias_kernel,
        out_shape=jax.ShapeDtypeStruct((n_pad, Cout), out_dtype),
        grid_spec=pltpu.PrefetchScalarGridSpec(
            num_scalar_prefetch=0,
            grid=(n_pad // tile_n,),
            in_specs=[
                pl.BlockSpec((tile_n, K), lambda i: (i, 0)),
                pl.BlockSpec((K, Cout), lambda i: (0, 0)),
                pl.BlockSpec((1, Cout), lambda i: (0, 0)),
            ],
            out_specs=pl.BlockSpec((tile_n, Cout), lambda i: (i, 0)),
        ),
        compiler_params=pltpu.CompilerParams(
            dimension_semantics=("parallel",)),
    )(x2d, w_t, b)
    return out[:N] if n_pad != N else out


# ----------------------------------------------------------------------------
# GRU recurrence kernel (time-blocked).
#   gi   : (TT, B, 3*Hp) f32   precomputed x @ W_ih^T + b_ih (gate-blocked layout)
#   whh  : (Hp, 3*Hp)   bf16   pre-transposed recurrent weights
#   bhh  : (1, 3*Hp)    f32
#   out  : (TT, B, Hp)  bf16
#   h_scr: (B, Hp)      f32    persistent hidden state across grid steps
# Gate layout along the 3*Hp axis: [reset | update | new], each lane-padded to Hp.
# Padded columns stay exactly zero across steps (zero weights/biases + h0=0).
# ----------------------------------------------------------------------------
def _gru_block_kernel(gi_ref, whh_ref, bhh_ref, out_ref, h_scr):
    tb = pl.program_id(0)

    @pl.when(tb == 0)
    def _():
        h_scr[...] = jnp.zeros_like(h_scr)  # h_0 = zeros (matches _init_hidden)

    B, Hp = h_scr.shape
    TT = out_ref.shape[0]

    whh = whh_ref[...]  # (Hp, 3Hp) bf16, read once per block
    # Hoist the bias broadcast out of the inner time loop.
    bhh_b = jnp.broadcast_to(bhh_ref[...], (B, 3 * Hp)).astype(jnp.float32)

    def step(t, h):
        gi_t = gi_ref[t].astype(jnp.float32)  # (B, 3Hp); b_ih already folded in
        gh = jnp.dot(h.astype(jnp.bfloat16), whh,
                     preferred_element_type=jnp.float32) + bhh_b
        r = jax.nn.sigmoid(gi_t[:, 0:Hp] + gh[:, 0:Hp])
        z = jax.nn.sigmoid(gi_t[:, Hp:2 * Hp] + gh[:, Hp:2 * Hp])
        n = jnp.tanh(gi_t[:, 2 * Hp:3 * Hp] + r * gh[:, 2 * Hp:3 * Hp])
        h_t = (1.0 - z) * n + z * h
        out_ref[t] = h_t.astype(out_ref.dtype)
        return h_t

    h_final = jax.lax.fori_loop(0, TT, step, h_scr[...], unroll=True)
    h_scr[...] = h_final


def gru_recurrence(gi, whh_t, bhh, *, time_block=16):
    """gi: (T, B, 3*Hp) f32;  whh_t: (Hp, 3*Hp) bf16;  bhh: (1, 3*Hp) f32."""
    T, B, threeHp = gi.shape
    Hp = threeHp // 3
    TT = min(time_block, T)
    t_pad = _round_up(T, TT)
    if t_pad != T:
        gi = jnp.pad(gi, ((0, t_pad - T), (0, 0), (0, 0)))
    out = pl.pallas_call(
        _gru_block_kernel,
        out_shape=jax.ShapeDtypeStruct((t_pad, B, Hp), jnp.bfloat16),
        grid_spec=pltpu.PrefetchScalarGridSpec(
            num_scalar_prefetch=0,
            grid=(t_pad // TT,),
            in_specs=[
                pl.BlockSpec((TT, B, 3 * Hp), lambda tb: (tb, 0, 0)),
                pl.BlockSpec((Hp, 3 * Hp), lambda tb: (0, 0)),
                pl.BlockSpec((1, 3 * Hp), lambda tb: (0, 0)),
            ],
            out_specs=pl.BlockSpec((TT, B, Hp), lambda tb: (tb, 0, 0)),
            scratch_shapes=[pltpu.VMEM((B, Hp), jnp.float32)],
        ),
        compiler_params=pltpu.CompilerParams(
            dimension_semantics=("arbitrary",)),  # time is a true recurrence
    )(gi, whh_t, bhh)
    return out[:T] if t_pad != T else out


# ----------------------------------------------------------------------------
# Host-side weight re-packing (one-time): PyTorch (3H, In) gate-stacked weights
# -> transposed, gate-blocked, lane-padded (rows_pad, 3*Hp) layout, zeros in pad.
# ----------------------------------------------------------------------------
def _pack_gate_weights(w, rows_pad, Hp):
    three_h, in_real = w.shape
    H = three_h // 3
    out = jnp.zeros((rows_pad, 3 * Hp), jnp.float32)
    for g in range(3):
        out = out.at[:in_real, g * Hp:g * Hp + H].set(w[g * H:(g + 1) * H, :].T)
    return out


def _pack_gate_bias(b, Hp):
    H = b.shape[1] // 3
    out = jnp.zeros((1, 3 * Hp), jnp.float32)
    for g in range(3):
        out = out.at[:, g * Hp:g * Hp + H].set(b[:, g * H:(g + 1) * H])
    return out


# ----------------------------------------------------------------------------
# SequencePredictor forward (bidirectional=False)
# ----------------------------------------------------------------------------
def sequence_predictor_forward(x, params, *, time_block=16):
    """x: (T, B, input_size) f32 -> (T, B, num_classes) f32."""
    T, B, _ = x.shape
    H = params["gru_layers"][0]["w_hh"].shape[1]
    Hp = _round_up(H, 128)

    h = x  # (T, B, width); width = I for layer 0, Hp (zero-padded) afterwards
    for layer in params["gru_layers"]:
        width = h.shape[-1]
        wih_t = _pack_gate_weights(layer["w_ih"], width, Hp).astype(jnp.bfloat16)
        whh_t = _pack_gate_weights(layer["w_hh"], Hp, Hp).astype(jnp.bfloat16)
        bih = _pack_gate_bias(layer["b_ih"], Hp)
        bhh = _pack_gate_bias(layer["b_hh"], Hp)

        # (1) Hoisted input projection: one big (T*B, width) x (width, 3Hp) matmul.
        gi = matmul_bias(h.reshape(T * B, width), wih_t, bih,
                         out_dtype=jnp.float32)
        gi = gi.reshape(T, B, 3 * Hp)

        # (2) Time-blocked recurrence (only the h @ W_hh^T matmul per step).
        h = gru_recurrence(gi, whh_t, bhh, time_block=time_block)  # (T,B,Hp) bf16

    # FC head: y = h @ fc_w^T + b, lane-padded output, tiled over N = T*B rows.
    C = params["fc_w"].shape[0]
    Cp = _round_up(C, 128)
    fcw_t = (jnp.zeros((Hp, Cp), jnp.float32)
             .at[:H, :C].set(params["fc_w"].T).astype(jnp.bfloat16))
    fcb = jnp.zeros((1, Cp), jnp.float32).at[:, :C].set(params["fc_b"])
    y = matmul_bias(h.reshape(T * B, Hp), fcw_t, fcb, out_dtype=jnp.float32)
    return y.reshape(T, B, Cp)[:, :, :C]


# ----------------------------------------------------------------------------
# Deterministic parameter init (PyTorch-style uniform(-1/sqrt(H), 1/sqrt(H)))
# ----------------------------------------------------------------------------
def init_params(key, input_size, hidden_size, num_layers, num_classes):
    k = 1.0 / jnp.sqrt(hidden_size)
    layers = []
    for l in range(num_layers):
        in_sz = input_size if l == 0 else hidden_size
        key, k1, k2, k3, k4 = jax.random.split(key, 5)
        layers.append({
            "w_ih": jax.random.uniform(k1, (3 * hidden_size, in_sz), jnp.float32, -k, k),
            "w_hh": jax.random.uniform(k2, (3 * hidden_size, hidden_size), jnp.float32, -k, k),
            "b_ih": jax.random.uniform(k3, (1, 3 * hidden_size), jnp.float32, -k, k),
            "b_hh": jax.random.uniform(k4, (1, 3 * hidden_size), jnp.float32, -k, k),
        })
    key, k1, k2 = jax.random.split(key, 3)
    fc_w = jax.random.uniform(k1, (num_classes, hidden_size), jnp.float32, -k, k)
    fc_b = jax.random.uniform(k2, (1, num_classes), jnp.float32, -k, k)
    return {"gru_layers": layers, "fc_w": fc_w, "fc_b": fc_b}


# ----------------------------------------------------------------------------
# Pure-JAX f32 reference (for correctness sanity check; kernel uses bf16 matmuls)
# ----------------------------------------------------------------------------
def _reference_forward(x, params):
    def gru_ref(xs, w_ih, w_hh, b_ih, b_hh):
        H = w_hh.shape[1]

        def step(h, x_t):
            gi = x_t @ w_ih.T + b_ih[0]
            gh = h @ w_hh.T + b_hh[0]
            r = jax.nn.sigmoid(gi[:, :H] + gh[:, :H])
            z = jax.nn.sigmoid(gi[:, H:2 * H] + gh[:, H:2 * H])
            n = jnp.tanh(gi[:, 2 * H:] + r * gh[:, 2 * H:])
            h_new = (1.0 - z) * n + z * h
            return h_new, h_new

        h0 = jnp.zeros((xs.shape[1], H), jnp.float32)
        _, ys = jax.lax.scan(step, h0, xs)
        return ys

    h = x
    for layer in params["gru_layers"]:
        h = gru_ref(h, layer["w_ih"], layer["w_hh"], layer["b_ih"], layer["b_hh"])
    return h @ params["fc_w"].T + params["fc_b"][0]


if __name__ == "__main__":
    seq_len, batch = 8, 2
    input_size, hidden_size, num_layers, num_classes = 16, 32, 2, 11

    key = jax.random.PRNGKey(0)
    key, kx, kp = jax.random.split(key, 3)
    x = jax.random.normal(kx, (seq_len, batch, input_size), jnp.float32)
    params = init_params(kp, input_size, hidden_size, num_layers, num_classes)

    fwd = jax.jit(functools.partial(sequence_predictor_forward, time_block=4))
    out = fwd(x, params)
    out = jax.block_until_ready(out)
    assert out.shape == (seq_len, batch, num_classes)

    ref = _reference_forward(x, params)
    # bf16 matmul inputs / bf16 inter-layer activations loosen the tolerance.
    assert jnp.allclose(out, ref, atol=7e-2, rtol=7e-2), "mismatch vs reference"

    print("KERNEL_OK")
</pallas_src>

<mosaic_0001>
module attributes {stable_mosaic.version = 11 : i64} {
  func.func @_matmul_bias_kernel(%arg0: i32, %arg1: memref<16x16xf32, #tpu.memory_space<vmem>>, %arg2: memref<16x384xbf16, #tpu.memory_space<vmem>>, %arg3: memref<1x384xf32, #tpu.memory_space<vmem>>, %arg4: memref<16x384xf32, #tpu.memory_space<vmem>>) attributes {dimension_semantics = [#tpu.dimension_semantics<parallel>], iteration_bounds = array<i64: 1>, scalar_prefetch = 0 : i64, scratch_operands = 0 : i64, tpu.core_type = #tpu.core_type<tc>, window_params = [{transform_indices = @transform_0, window_bounds = array<i64: 16, 16>}, {pipeline_mode = #tpu.pipeline_mode<synchronous>, transform_indices = @transform_1, window_bounds = array<i64: 16, 384>}, {pipeline_mode = #tpu.pipeline_mode<synchronous>, transform_indices = @transform_2, window_bounds = array<i64: 1, 384>}, {transform_indices = @transform_3, window_bounds = array<i64: 16, 384>}]} {
    %c0 = arith.constant 0 : index
    %c0_0 = arith.constant 0 : index
    %0 = vector.load %arg1[%c0, %c0_0] : memref<16x16xf32, #tpu.memory_space<vmem>>, vector<16x16xf32>
    %1 = arith.truncf %0 : vector<16x16xf32> to vector<16x16xbf16>
    %c0_1 = arith.constant 0 : index
    %c0_2 = arith.constant 0 : index
    %2 = vector.load %arg2[%c0_1, %c0_2] : memref<16x384xbf16, #tpu.memory_space<vmem>>, vector<16x384xbf16>
    %cst = arith.constant dense<0.000000e+00> : vector<16x384xf32>
    %3 = tpu.matmul %1, %2, %cst {dimension_numbers = #tpu.dot_dimension_numbers<[1], [0], [0], [1], [0, 0, 1, 1], [], []>} : vector<16x16xbf16>, vector<16x384xbf16>, vector<16x384xf32> -> vector<16x384xf32>
    %c0_3 = arith.constant 0 : index
    %c0_4 = arith.constant 0 : index
    %4 = vector.load %arg3[%c0_3, %c0_4] : memref<1x384xf32, #tpu.memory_space<vmem>>, vector<1x384xf32>
    %5 = vector.broadcast %4 : vector<1x384xf32> to vector<16x384xf32>
    %6 = arith.addf %3, %5 : vector<16x384xf32>
    %c0_5 = arith.constant 0 : index
    %c0_6 = arith.constant 0 : index
    %7 = vector.load %arg4[%c0_5, %c0_6] : memref<16x384xf32, #tpu.memory_space<vmem>>, vector<16x384xf32>
    tpu.vector_store %arg4[%c0_5, %c0_6], %6 {strides = array<i32>} : memref<16x384xf32, #tpu.memory_space<vmem>>, vector<16x384xf32>,
    return
  }
  func.func @transform_0(%arg0: i32) -> (i32, i32) {
    %c0_i32 = arith.constant 0 : i32
    %c0_i32_0 = arith.constant 0 : i32
    return %arg0, %c0_i32 : i32, i32
  }
  func.func @transform_1(%arg0: i32) -> (i32, i32) {
    %c0_i32 = arith.constant 0 : i32
    %c0_i32_0 = arith.constant 0 : i32
    %c0_i32_1 = arith.constant 0 : i32
    return %c0_i32, %c0_i32_0 : i32, i32
  }
  func.func @transform_2(%arg0: i32) -> (i32, i32) {
    %c0_i32 = arith.constant 0 : i32
    %c0_i32_0 = arith.constant 0 : i32
    %c0_i32_1 = arith.constant 0 : i32
    return %c0_i32, %c0_i32_0 : i32, i32
  }
  func.func @transform_3(%arg0: i32) -> (i32, i32) {
    %c0_i32 = arith.constant 0 : i32
    %c0_i32_0 = arith.constant 0 : i32
    return %arg0, %c0_i32 : i32, i32
  }
}

module attributes {stable_mosaic.version = 11 : i64} {
  func.func @_gru_block_kernel(%arg0: i32, %arg1: memref<4x2x384xf32, #tpu.memory_space<vmem>>, %arg2: memref<128x384xbf16, #tpu.memory_space<vmem>>, %arg3: memref<1x384xf32, #tpu.memory_space<vmem>>, %arg4: memref<4x2x128xbf16, #tpu.memory_space<vmem>>, %arg5: memref<2x128xf32, #tpu.memory_space<vmem>>) attributes {dimension_semantics = [#tpu.dimension_semantics<arbitrary>], iteration_bounds = array<i64: 2>, scalar_prefetch = 0 : i64, scratch_operands = 1 : i64, tpu.core_type = #tpu.core_type<tc>, window_params = [{transform_indices = @transform_0, window_bounds = array<i64: 4, 2, 384>}, {pipeline_mode = #tpu.pipeline_mode<synchronous>, transform_indices = @transform_1, window_bounds = array<i64: 128, 384>}, {pipeline_mode = #tpu.pipeline_mode<synchronous>, transform_indices = @transform_2, window_bounds = array<i64: 1, 384>}, {transform_indices = @transform_3, window_bounds = array<i64: 4, 2, 128>}]} {
    %c0_i32 = arith.constant 0 : i32
    %0 = arith.cmpi eq, %arg0, %c0_i32 : i32
    %1 = arith.extui %0 : i1 to i32
    %c0_i32_0 = arith.constant 0 : i32
    %2 = arith.cmpi ne, %1, %c0_i32_0 : i32
    scf.if %2 {
      %cst_40 = arith.constant 0.000000e+00 : f32
      %157 = vector.broadcast %cst_40 : f32 to vector<2x128xf32>
      %c0_41 = arith.constant 0 : index
      %c0_42 = arith.constant 0 : index
      %158 = vector.load %arg5[%c0_41, %c0_42] : memref<2x128xf32, #tpu.memory_space<vmem>>, vector<2x128xf32>
      tpu.vector_store %arg5[%c0_41, %c0_42], %157 {strides = array<i32>} : memref<2x128xf32, #tpu.memory_space<vmem>>, vector<2x128xf32>,
    } else {
    }
    %c0 = arith.constant 0 : index
    %c0_1 = arith.constant 0 : index
    %3 = vector.load %arg2[%c0, %c0_1] : memref<128x384xbf16, #tpu.memory_space<vmem>>, vector<128x384xbf16>
    %c0_2 = arith.constant 0 : index
    %c0_3 = arith.constant 0 : index
    %4 = vector.load %arg3[%c0_2, %c0_3] : memref<1x384xf32, #tpu.memory_space<vmem>>, vector<1x384xf32>
    %5 = vector.shape_cast %4 : vector<1x384xf32> to vector<1x384xf32>
    %6 = vector.broadcast %5 : vector<1x384xf32> to vector<2x384xf32>
    %c0_4 = arith.constant 0 : index
    %c0_5 = arith.constant 0 : index
    %7 = vector.load %arg5[%c0_4, %c0_5] : memref<2x128xf32, #tpu.memory_space<vmem>>, vector<2x128xf32>
    %c0_i32_6 = arith.constant 0 : i32
    %8 = arith.index_cast %c0_i32_6 : i32 to index
    %c0_7 = arith.constant 0 : index
    %c0_8 = arith.constant 0 : index
    %9 = vector.load %arg1[%8, %c0_7, %c0_8] : memref<4x2x384xf32, #tpu.memory_space<vmem>>, vector<1x2x384xf32>
    %10 = vector.shape_cast %9 : vector<1x2x384xf32> to vector<2x384xf32>
    %11 = arith.truncf %7 : vector<2x128xf32> to vector<2x128xbf16>
    %cst = arith.constant dense<0.000000e+00> : vector<2x384xf32>
    %12 = tpu.matmul %11, %3, %cst {dimension_numbers = #tpu.dot_dimension_numbers<[1], [0], [0], [1], [0, 0, 1, 1], [], []>} : vector<2x128xbf16>, vector<128x384xbf16>, vector<2x384xf32> -> vector<2x384xf32>
    %13 = arith.addf %12, %6 : vector<2x384xf32>
    %14 = vector.extract_strided_slice %10 {offsets = [0, 0], sizes = [2, 128], strides = [1, 1]} : vector<2x384xf32> to vector<2x128xf32>
    %15 = vector.extract_strided_slice %13 {offsets = [0, 0], sizes = [2, 128], strides = [1, 1]} : vector<2x384xf32> to vector<2x128xf32>
    %16 = arith.addf %14, %15 : vector<2x128xf32>
    %17 = arith.negf %16 : vector<2x128xf32>
    %18 = math.exp %17 : vector<2x128xf32>
    %cst_9 = arith.constant 1.000000e+00 : f32
    %19 = vector.broadcast %cst_9 : f32 to vector<2x128xf32>
    %20 = arith.addf %19, %18 : vector<2x128xf32>
    %21 = arith.divf %19, %20 : vector<2x128xf32>
    %22 = vector.extract_strided_slice %10 {offsets = [0, 128], sizes = [2, 128], strides = [1, 1]} : vector<2x384xf32> to vector<2x128xf32>
    %23 = vector.extract_strided_slice %13 {offsets = [0, 128], sizes = [2, 128], strides = [1, 1]} : vector<2x384xf32> to vector<2x128xf32>
    %24 = arith.addf %22, %23 : vector<2x128xf32>
    %25 = arith.negf %24 : vector<2x128xf32>
    %26 = math.exp %25 : vector<2x128xf32>
    %cst_10 = arith.constant 1.000000e+00 : f32
    %27 = vector.broadcast %cst_10 : f32 to vector<2x128xf32>
    %28 = arith.addf %27, %26 : vector<2x128xf32>
    %29 = arith.divf %27, %28 : vector<2x128xf32>
    %30 = vector.extract_strided_slice %10 {offsets = [0, 256], sizes = [2, 128], strides = [1, 1]} : vector<2x384xf32> to vector<2x128xf32>
    %31 = vector.extract_strided_slice %13 {offsets = [0, 256], sizes = [2, 128], strides = [1, 1]} : vector<2x384xf32> to vector<2x128xf32>
    %32 = arith.mulf %21, %31 : vector<2x128xf32>
    %33 = arith.addf %30, %32 : vector<2x128xf32>
    %34 = math.tanh %33 : vector<2x128xf32>
    %cst_11 = arith.constant 1.000000e+00 : f32
    %35 = vector.broadcast %cst_11 : f32 to vector<2x128xf32>
    %36 = arith.subf %35, %29 : vector<2x128xf32>
    %37 = arith.mulf %36, %34 : vector<2x128xf32>
    %38 = arith.mulf %29, %7 : vector<2x128xf32>
    %39 = arith.addf %37, %38 : vector<2x128xf32>
    %40 = arith.truncf %39 : vector<2x128xf32> to vector<2x128xbf16>
    %41 = arith.index_cast %c0_i32_6 : i32 to index
    %c0_12 = arith.constant 0 : index
    %c0_13 = arith.constant 0 : index
    %42 = vector.load %arg4[%41, %c0_12, %c0_13] : memref<4x2x128xbf16, #tpu.memory_space<vmem>>, vector<1x2x128xbf16>
    %43 = vector.shape_cast %42 : vector<1x2x128xbf16> to vector<2x128xbf16>
    %44 = vector.shape_cast %40 : vector<2x128xbf16> to vector<1x2x128xbf16>
    tpu.vector_store %arg4[%41, %c0_12, %c0_13], %44 {strides = array<i32>} : memref<4x2x128xbf16, #tpu.memory_space<vmem>>, vector<1x2x128xbf16>,
    %c1_i32 = arith.constant 1 : i32
    %45 = arith.index_cast %c1_i32 : i32 to index
    %c0_14 = arith.constant 0 : index
    %c0_15 = arith.constant 0 : index
    %46 = vector.load %arg1[%45, %c0_14, %c0_15] : memref<4x2x384xf32, #tpu.memory_space<vmem>>, vector<1x2x384xf32>
    %47 = vector.shape_cast %46 : vector<1x2x384xf32> to vector<2x384xf32>
    %48 = arith.truncf %39 : vector<2x128xf32> to vector<2x128xbf16>
    %cst_16 = arith.constant dense<0.000000e+00> : vector<2x384xf32>
    %49 = tpu.matmul %48, %3, %cst_16 {dimension_numbers = #tpu.dot_dimension_numbers<[1], [0], [0], [1], [0, 0, 1, 1], [], []>} : vector<2x128xbf16>, vector<128x384xbf16>, vector<2x384xf32> -> vector<2x384xf32>
    %50 = arith.addf %49, %6 : vector<2x384xf32>
    %51 = vector.extract_strided_slice %47 {offsets = [0, 0], sizes = [2, 128], strides = [1, 1]} : vector<2x384xf32> to vector<2x128xf32>
    %52 = vector.extract_strided_slice %50 {offsets = [0, 0], sizes = [2, 128], strides = [1, 1]} : vector<2x384xf32> to vector<2x128xf32>
    %53 = arith.addf %51, %52 : vector<2x128xf32>
    %54 = arith.negf %53 : vector<2x128xf32>
    %55 = math.exp %54 : vector<2x128xf32>
    %cst_17 = arith.constant 1.000000e+00 : f32
    %56 = vector.broadcast %cst_17 : f32 to vector<2x128xf32>
    %57 = arith.addf %56, %55 : vector<2x128xf32>
    %58 = arith.divf %56, %57 : vector<2x128xf32>
    %59 = vector.extract_strided_slice %47 {offsets = [0, 128], sizes = [2, 128], strides = [1, 1]} : vector<2x384xf32> to vector<2x128xf32>
    %60 = vector.extract_strided_slice %50 {offsets = [0, 128], sizes = [2, 128], strides = [1, 1]} : vector<2x384xf32> to vector<2x128xf32>
    %61 = arith.addf %59, %60 : vector<2x128xf32>
    %62 = arith.negf %61 : vector<2x128xf32>
    %63 = math.exp %62 : vector<2x128xf32>
    %cst_18 = arith.constant 1.000000e+00 : f32
    %64 = vector.broadcast %cst_18 : f32 to vector<2x128xf32>
    %65 = arith.addf %64, %63 : vector<2x128xf32>
    %66 = arith.divf %64, %65 : vector<2x128xf32>
    %67 = vector.extract_strided_slice %47 {offsets = [0, 256], sizes = [2, 128], strides = [1, 1]} : vector<2x384xf32> to vector<2x128xf32>
    %68 = vector.extract_strided_slice %50 {offsets = [0, 256], sizes = [2, 128], strides = [1, 1]} : vector<2x384xf32> to vector<2x128xf32>
    %69 = arith.mulf %58, %68 : vector<2x128xf32>
    %70 = arith.addf %67, %69 : vector<2x128xf32>
    %71 = math.tanh %70 : vector<2x128xf32>
    %cst_19 = arith.constant 1.000000e+00 : f32
    %72 = vector.broadcast %cst_19 : f32 to vector<2x128xf32>
    %73 = arith.subf %72, %66 : vector<2x128xf32>
    %74 = arith.mulf %73, %71 : vector<2x128xf32>
    %75 = arith.mulf %66, %39 : vector<2x128xf32>
    %76 = arith.addf %74, %75 : vector<2x128xf32>
    %77 = arith.truncf %76 : vector<2x128xf32> to vector<2x128xbf16>
    %78 = arith.index_cast %c1_i32 : i32 to index
    %c0_20 = arith.constant 0 : index
    %c0_21 = arith.constant 0 : index
    %79 = vector.load %arg4[%78, %c0_20, %c0_21] : memref<4x2x128xbf16, #tpu.memory_space<vmem>>, vector<1x2x128xbf16>
    %80 = vector.shape_cast %79 : vector<1x2x128xbf16> to vector<2x128xbf16>
    %81 = vector.shape_cast %77 : vector<2x128xbf16> to vector<1x2x128xbf16>
    tpu.vector_store %arg4[%78, %c0_20, %c0_21], %81 {strides = array<i32>} : memref<4x2x128xbf16, #tpu.memory_space<vmem>>, vector<1x2x128xbf16>,
    %c2_i32 = arith.constant 2 : i32
    %82 = arith.index_cast %c2_i32 : i32 to index
    %c0_22 = arith.constant 0 : index
    %c0_23 = arith.constant 0 : index
    %83 = vector.load %arg1[%82, %c0_22, %c0_23] : memref<4x2x384xf32, #tpu.memory_space<vmem>>, vector<1x2x384xf32>
    %84 = vector.shape_cast %83 : vector<1x2x384xf32> to vector<2x384xf32>
    %85 = arith.truncf %76 : vector<2x128xf32> to vector<2x128xbf16>
    %cst_24 = arith.constant dense<0.000000e+00> : vector<2x384xf32>
    %86 = tpu.matmul %85, %3, %cst_24 {dimension_numbers = #tpu.dot_dimension_numbers<[1], [0], [0], [1], [0, 0, 1, 1], [], []>} : vector<2x128xbf16>, vector<128x384xbf16>, vector<2x384xf32> -> vector<2x384xf32>
    %87 = arith.addf %86, %6 : vector<2x384xf32>
    %88 = vector.extract_strided_slice %84 {offsets = [0, 0], sizes = [2, 128], strides = [1, 1]} : vector<2x384xf32> to vector<2x128xf32>
    %89 = vector.extract_strided_slice %87 {offsets = [0, 0], sizes = [2, 128], strides = [1, 1]} : vector<2x384xf32> to vector<2x128xf32>
    %90 = arith.addf %88, %89 : vector<2x128xf32>
    %91 = arith.negf %90 : vector<2x128xf32>
    %92 = math.exp %91 : vector<2x128xf32>
    %cst_25 = arith.constant 1.000000e+00 : f32
    %93 = vector.broadcast %cst_25 : f32 to vector<2x128xf32>
    %94 = arith.addf %93, %92 : vector<2x128xf32>
    %95 = arith.divf %93, %94 : vector<2x128xf32>
    %96 = vector.extract_strided_slice %84 {offsets = [0, 128], sizes = [2, 128], strides = [1, 1]} : vector<2x384xf32> to vector<2x128xf32>
    %97 = vector.extract_strided_slice %87 {offsets = [0, 128], sizes = [2, 128], strides = [1, 1]} : vector<2x384xf32> to vector<2x128xf32>
    %98 = arith.addf %96, %97 : vector<2x128xf32>
    %99 = arith.negf %98 : vector<2x128xf32>
    %100 = math.exp %99 : vector<2x128xf32>
    %cst_26 = arith.constant 1.000000e+00 : f32
    %101 = vector.broadcast %cst_26 : f32 to vector<2x128xf32>
    %102 = arith.addf %101, %100 : vector<2x128xf32>
    %103 = arith.divf %101, %102 : vector<2x128xf32>
    %104 = vector.extract_strided_slice %84 {offsets = [0, 256], sizes = [2, 128], strides = [1, 1]} : vector<2x384xf32> to vector<2x128xf32>
    %105 = vector.extract_strided_slice %87 {offsets = [0, 256], sizes = [2, 128], strides = [1, 1]} : vector<2x384xf32> to vector<2x128xf32>
    %106 = arith.mulf %95, %105 : vector<2x128xf32>
    %107 = arith.addf %104, %106 : vector<2x128xf32>
    %108 = math.tanh %107 : vector<2x128xf32>
    %cst_27 = arith.constant 1.000000e+00 : f32
    %109 = vector.broadcast %cst_27 : f32 to vector<2x128xf32>
    %110 = arith.subf %109, %103 : vector<2x128xf32>
    %111 = arith.mulf %110, %108 : vector<2x128xf32>
    %112 = arith.mulf %103, %76 : vector<2x128xf32>
    %113 = arith.addf %111, %112 : vector<2x128xf32>
    %114 = arith.truncf %113 : vector<2x128xf32> to vector<2x128xbf16>
    %115 = arith.index_cast %c2_i32 : i32 to index
    %c0_28 = arith.constant 0 : index
    %c0_29 = arith.constant 0 : index
    %116 = vector.load %arg4[%115, %c0_28, %c0_29] : memref<4x2x128xbf16, #tpu.memory_space<vmem>>, vector<1x2x128xbf16>
    %117 = vector.shape_cast %116 : vector<1x2x128xbf16> to vector<2x128xbf16>
    %118 = vector.shape_cast %114 : vector<2x128xbf16> to vector<1x2x128xbf16>
    tpu.vector_store %arg4[%115, %c0_28, %c0_29], %118 {strides = array<i32>} : memref<4x2x128xbf16, #tpu.memory_space<vmem>>, vector<1x2x128xbf16>,
    %c3_i32 = arith.constant 3 : i32
    %119 = arith.index_cast %c3_i32 : i32 to index
    %c0_30 = arith.constant 0 : index
    %c0_31 = arith.constant 0 : index
    %120 = vector.load %arg1[%119, %c0_30, %c0_31] : memref<4x2x384xf32, #tpu.memory_space<vmem>>, vector<1x2x384xf32>
    %121 = vector.shape_cast %120 : vector<1x2x384xf32> to vector<2x384xf32>
    %122 = arith.truncf %113 : vector<2x128xf32> to vector<2x128xbf16>
    %cst_32 = arith.constant dense<0.000000e+00> : vector<2x384xf32>
    %123 = tpu.matmul %122, %3, %cst_32 {dimension_numbers = #tpu.dot_dimension_numbers<[1], [0], [0], [1], [0, 0, 1, 1], [], []>} : vector<2x128xbf16>, vector<128x384xbf16>, vector<2x384xf32> -> vector<2x384xf32>
    %124 = arith.addf %123, %6 : vector<2x384xf32>
    %125 = vector.extract_strided_slice %121 {offsets = [0, 0], sizes = [2, 128], strides = [1, 1]} : vector<2x384xf32> to vector<2x128xf32>
    %126 = vector.extract_strided_slice %124 {offsets = [0, 0], sizes = [2, 128], strides = [1, 1]} : vector<2x384xf32> to vector<2x128xf32>
    %127 = arith.addf %125, %126 : vector<2x128xf32>
    %128 = arith.negf %127 : vector<2x128xf32>
    %129 = math.exp %128 : vector<2x128xf32>
    %cst_33 = arith.constant 1.000000e+00 : f32
    %130 = vector.broadcast %cst_33 : f32 to vector<2x128xf32>
    %131 = arith.addf %130, %129 : vector<2x128xf32>
    %132 = arith.divf %130, %131 : vector<2x128xf32>
    %133 = vector.extract_strided_slice %121 {offsets = [0, 128], sizes = [2, 128], strides = [1, 1]} : vector<2x384xf32> to vector<2x128xf32>
    %134 = vector.extract_strided_slice %124 {offsets = [0, 128], sizes = [2, 128], strides = [1, 1]} : vector<2x384xf32> to vector<2x128xf32>
    %135 = arith.addf %133, %134 : vector<2x128xf32>
    %136 = arith.negf %135 : vector<2x128xf32>
    %137 = math.exp %136 : vector<2x128xf32>
    %cst_34 = arith.constant 1.000000e+00 : f32
    %138 = vector.broadcast %cst_34 : f32 to vector<2x128xf32>
    %139 = arith.addf %138, %137 : vector<2x128xf32>
    %140 = arith.divf %138, %139 : vector<2x128xf32>
    %141 = vector.extract_strided_slice %121 {offsets = [0, 256], sizes = [2, 128], strides = [1, 1]} : vector<2x384xf32> to vector<2x128xf32>
    %142 = vector.extract_strided_slice %124 {offsets = [0, 256], sizes = [2, 128], strides = [1, 1]} : vector<2x384xf32> to vector<2x128xf32>
    %143 = arith.mulf %132, %142 : vector<2x128xf32>
    %144 = arith.addf %141, %143 : vector<2x128xf32>
    %145 = math.tanh %144 : vector<2x128xf32>
    %cst_35 = arith.constant 1.000000e+00 : f32
    %146 = vector.broadcast %cst_35 : f32 to vector<2x128xf32>
    %147 = arith.subf %146, %140 : vector<2x128xf32>
    %148 = arith.mulf %147, %145 : vector<2x128xf32>
    %149 = arith.mulf %140, %113 : vector<2x128xf32>
    %150 = arith.addf %148, %149 : vector<2x128xf32>
    %151 = arith.truncf %150 : vector<2x128xf32> to vector<2x128xbf16>
    %152 = arith.index_cast %c3_i32 : i32 to index
    %c0_36 = arith.constant 0 : index
    %c0_37 = arith.constant 0 : index
    %153 = vector.load %arg4[%152, %c0_36, %c0_37] : memref<4x2x128xbf16, #tpu.memory_space<vmem>>, vector<1x2x128xbf16>
    %154 = vector.shape_cast %153 : vector<1x2x128xbf16> to vector<2x128xbf16>
    %155 = vector.shape_cast %151 : vector<2x128xbf16> to vector<1x2x128xbf16>
    tpu.vector_store %arg4[%152, %c0_36, %c0_37], %155 {strides = array<i32>} : memref<4x2x128xbf16, #tpu.memory_space<vmem>>, vector<1x2x128xbf16>,
    %c4_i32 = arith.constant 4 : i32
    %c0_38 = arith.constant 0 : index
    %c0_39 = arith.constant 0 : index
    %156 = vector.load %arg5[%c0_38, %c0_39] : memref<2x128xf32, #tpu.memory_space<vmem>>, vector<2x128xf32>
    tpu.vector_store %arg5[%c0_38, %c0_39], %150 {strides = array<i32>} : memref<2x128xf32, #tpu.memory_space<vmem>>, vector<2x128xf32>,
    return
  }
  func.func @transform_0(%arg0: i32) -> (i32, i32, i32) {
    %c0_i32 = arith.constant 0 : i32
    %c0_i32_0 = arith.constant 0 : i32
    %c0_i32_1 = arith.constant 0 : i32
    return %arg0, %c0_i32, %c0_i32_0 : i32, i32, i32
  }
  func.func @transform_1(%arg0: i32) -> (i32, i32) {
    %c0_i32 = arith.constant 0 : i32
    %c0_i32_0 = arith.constant 0 : i32
    %c0_i32_1 = arith.constant 0 : i32
    return %c0_i32, %c0_i32_0 : i32, i32
  }
  func.func @transform_2(%arg0: i32) -> (i32, i32) {
    %c0_i32 = arith.constant 0 : i32
    %c0_i32_0 = arith.constant 0 : i32
    %c0_i32_1 = arith.constant 0 : i32
    return %c0_i32, %c0_i32_0 : i32, i32
  }
  func.func @transform_3(%arg0: i32) -> (i32, i32, i32) {
    %c0_i32 = arith.constant 0 : i32
    %c0_i32_0 = arith.constant 0 : i32
    %c0_i32_1 = arith.constant 0 : i32
    return %arg0, %c0_i32, %c0_i32_0 : i32, i32, i32
  }
}

module attributes {stable_mosaic.version = 11 : i64} {
  func.func @_matmul_bias_kernel(%arg0: i32, %arg1: memref<16x128xbf16, #tpu.memory_space<vmem>>, %arg2: memref<128x384xbf16, #tpu.memory_space<vmem>>, %arg3: memref<1x384xf32, #tpu.memory_space<vmem>>, %arg4: memref<16x384xf32, #tpu.memory_space<vmem>>) attributes {dimension_semantics = [#tpu.dimension_semantics<parallel>], iteration_bounds = array<i64: 1>, scalar_prefetch = 0 : i64, scratch_operands = 0 : i64, tpu.core_type = #tpu.core_type<tc>, window_params = [{transform_indices = @transform_0, window_bounds = array<i64: 16, 128>}, {pipeline_mode = #tpu.pipeline_mode<synchronous>, transform_indices = @transform_1, window_bounds = array<i64: 128, 384>}, {pipeline_mode = #tpu.pipeline_mode<synchronous>, transform_indices = @transform_2, window_bounds = array<i64: 1, 384>}, {transform_indices = @transform_3, window_bounds = array<i64: 16, 384>}]} {
    %c0 = arith.constant 0 : index
    %c0_0 = arith.constant 0 : index
    %0 = vector.load %arg1[%c0, %c0_0] : memref<16x128xbf16, #tpu.memory_space<vmem>>, vector<16x128xbf16>
    %c0_1 = arith.constant 0 : index
    %c0_2 = arith.constant 0 : index
    %1 = vector.load %arg2[%c0_1, %c0_2] : memref<128x384xbf16, #tpu.memory_space<vmem>>, vector<128x384xbf16>
    %cst = arith.constant dense<0.000000e+00> : vector<16x384xf32>
    %2 = tpu.matmul %0, %1, %cst {dimension_numbers = #tpu.dot_dimension_numbers<[1], [0], [0], [1], [0, 0, 1, 1], [], []>} : vector<16x128xbf16>, vector<128x384xbf16>, vector<16x384xf32> -> vector<16x384xf32>
    %c0_3 = arith.constant 0 : index
    %c0_4 = arith.constant 0 : index
    %3 = vector.load %arg3[%c0_3, %c0_4] : memref<1x384xf32, #tpu.memory_space<vmem>>, vector<1x384xf32>
    %4 = vector.broadcast %3 : vector<1x384xf32> to vector<16x384xf32>
    %5 = arith.addf %2, %4 : vector<16x384xf32>
    %c0_5 = arith.constant 0 : index
    %c0_6 = arith.constant 0 : index
    %6 = vector.load %arg4[%c0_5, %c0_6] : memref<16x384xf32, #tpu.memory_space<vmem>>, vector<16x384xf32>
    tpu.vector_store %arg4[%c0_5, %c0_6], %5 {strides = array<i32>} : memref<16x384xf32, #tpu.memory_space<vmem>>, vector<16x384xf32>,
    return
  }
  func.func @transform_0(%arg0: i32) -> (i32, i32) {
    %c0_i32 = arith.constant 0 : i32
    %c0_i32_0 = arith.constant 0 : i32
    return %arg0, %c0_i32 : i32, i32
  }
  func.func @transform_1(%arg0: i32) -> (i32, i32) {
    %c0_i32 = arith.constant 0 : i32
    %c0_i32_0 = arith.constant 0 : i32
    %c0_i32_1 = arith.constant 0 : i32
    return %c0_i32, %c0_i32_0 : i32, i32
  }
  func.func @transform_2(%arg0: i32) -> (i32, i32) {
    %c0_i32 = arith.constant 0 : i32
    %c0_i32_0 = arith.constant 0 : i32
    %c0_i32_1 = arith.constant 0 : i32
    return %c0_i32, %c0_i32_0 : i32, i32
  }
  func.func @transform_3(%arg0: i32) -> (i32, i32) {
    %c0_i32 = arith.constant 0 : i32
    %c0_i32_0 = arith.constant 0 : i32
    return %arg0, %c0_i32 : i32, i32
  }
}

module attributes {stable_mosaic.version = 11 : i64} {
  func.func @_matmul_bias_kernel(%arg0: i32, %arg1: memref<16x128xbf16, #tpu.memory_space<vmem>>, %arg2: memref<128x128xbf16, #tpu.memory_space<vmem>>, %arg3: memref<1x128xf32, #tpu.memory_space<vmem>>, %arg4: memref<16x128xf32, #tpu.memory_space<vmem>>) attributes {dimension_semantics = [#tpu.dimension_semantics<parallel>], iteration_bounds = array<i64: 1>, scalar_prefetch = 0 : i64, scratch_operands = 0 : i64, tpu.core_type = #tpu.core_type<tc>, window_params = [{transform_indices = @transform_0, window_bounds = array<i64: 16, 128>}, {pipeline_mode = #tpu.pipeline_mode<synchronous>, transform_indices = @transform_1, window_bounds = array<i64: 128, 128>}, {pipeline_mode = #tpu.pipeline_mode<synchronous>, transform_indices = @transform_2, window_bounds = array<i64: 1, 128>}, {transform_indices = @transform_3, window_bounds = array<i64: 16, 128>}]} {
    %c0 = arith.constant 0 : index
    %c0_0 = arith.constant 0 : index
    %0 = vector.load %arg1[%c0, %c0_0] : memref<16x128xbf16, #tpu.memory_space<vmem>>, vector<16x128xbf16>
    %c0_1 = arith.constant 0 : index
    %c0_2 = arith.constant 0 : index
    %1 = vector.load %arg2[%c0_1, %c0_2] : memref<128x128xbf16, #tpu.memory_space<vmem>>, vector<128x128xbf16>
    %cst = arith.constant dense<0.000000e+00> : vector<16x128xf32>
    %2 = tpu.matmul %0, %1, %cst {dimension_numbers = #tpu.dot_dimension_numbers<[1], [0], [0], [1], [0, 0, 1, 1], [], []>} : vector<16x128xbf16>, vector<128x128xbf16>, vector<16x128xf32> -> vector<16x128xf32>
    %c0_3 = arith.constant 0 : index
    %c0_4 = arith.constant 0 : index
    %3 = vector.load %arg3[%c0_3, %c0_4] : memref<1x128xf32, #tpu.memory_space<vmem>>, vector<1x128xf32>
    %4 = vector.broadcast %3 : vector<1x128xf32> to vector<16x128xf32>
    %5 = arith.addf %2, %4 : vector<16x128xf32>
    %c0_5 = arith.constant 0 : index
    %c0_6 = arith.constant 0 : index
    %6 = vector.load %arg4[%c0_5, %c0_6] : memref<16x128xf32, #tpu.memory_space<vmem>>, vector<16x128xf32>
    tpu.vector_store %arg4[%c0_5, %c0_6], %5 {strides = array<i32>} : memref<16x128xf32, #tpu.memory_space<vmem>>, vector<16x128xf32>,
    return
  }
  func.func @transform_0(%arg0: i32) -> (i32, i32) {
    %c0_i32 = arith.constant 0 : i32
    %c0_i32_0 = arith.constant 0 : i32
    return %arg0, %c0_i32 : i32, i32
  }
  func.func @transform_1(%arg0: i32) -> (i32, i32) {
    %c0_i32 = arith.constant 0 : i32
    %c0_i32_0 = arith.constant 0 : i32
    %c0_i32_1 = arith.constant 0 : i32
    return %c0_i32, %c0_i32_0 : i32, i32
  }
  func.func @transform_2(%arg0: i32) -> (i32, i32) {
    %c0_i32 = arith.constant 0 : i32
    %c0_i32_0 = arith.constant 0 : i32
    %c0_i32_1 = arith.constant 0 : i32
    return %c0_i32, %c0_i32_0 : i32, i32
  }
  func.func @transform_3(%arg0: i32) -> (i32, i32) {
    %c0_i32 = arith.constant 0 : i32
    %c0_i32_0 = arith.constant 0 : i32
    return %arg0, %c0_i32 : i32, i32
  }
}

</mosaic_0001>

<bundles_post_ra>
// kernel: sequence_predictor_forward.5
= control target key start
LH: loop header
LB: loop body
LE: loop exit
PB: predicated region body
PF: predicated region fallthrough
CT: control target
= control target key end

     0   :  { %v173_v0 = vmov 0.0   ;;  %vm174_vm0 = vmmov 0   ;;  %v175_v3 = vmov 0   ;;  %vm55_vm1 = vcmask 130048   ;;  %s232_s1 = inlined_call_operand.vmem [shape: bf16[16,384], index: 1, kind: input, shape index: {}]   ;;  %s233_s0 = inlined_call_operand.vmem [shape: f32[16,16], index: 0, kind: input, shape index: {}]   ;;  %s234_s2 = inlined_call_operand.vmem [shape: f32[1,384], index: 2, kind: input, shape index: {}]   ;;  %s235_s3 = inlined_call_operand.vmem [shape: f32[16,384], index: 3, kind: output, shape index: {}]  }
   0x1   :  { %160 = vmatprep.subr.bf16.mxu1 %v173_v0  ;;  %v169_v1 = vld [vmem:[%s232_s1 + $0x4] ss:$12 sps:$4 sm:$0xff]   ;;  %162 = vmatprep.mubr.msk.bf16.mxu1 %vm174_vm0, %v173_v0  ;;  %v171_v2 = vld [vmem:[%s232_s1 + $0x8] ss:$12 sps:$4 sm:$0xff]   ;;  %v172_v4 = vld [vmem:[%s232_s1] ss:$12 sps:$4 sm:$0xff]   ;;  %v24_v8 = vlaneseq }
   0x2   :  { %91 = vmatprep.mubr.bf16.mxu0 %v175_v3  ;;  %59 = vmatprep.subr.bf16.mxu0 %v169_v1  ;;  %v15_v5 = vld [vmem:[%s233_s0] sm:$0xff]  ;;  %v16_v6 = vld [vmem:[%s233_s0 + $0x8] sm:$0xff] }
   0x3   :  { %161 = vmatpush3.bf16.msra.mxu1 %v171_v2  ;;  %v17_v7 = vpack.c.bf16 %v16_v6, %v15_v5  ;;  %60 = vmatpush1.bf16.msra.mxu0 %v172_v4  ;;  %v25_v9 = vshrl.u32 %v24_v8, 7  ;;  %v22_v11 = vld [vmem:[%s234_s2] sm:$0x7] }
   0x5   :  { %v34_v10 = vsub.s32 2, %v25_v9  ;;  %v26_v12 = vsub.s32 0, %v25_v9  ;;  %v30_v13 = vsub.s32 1, %v25_v9 }
   0x6   :  { %163 = vmatmul.mubr.msk.bf16.vlgmr.msra.gmra.mrb[0].mxu1 %vm55_vm1, %v17_v7  ;;  %156 = vmatmul.mubr.msk.bf16.vlgmr.msra.gmra.mrb[0].mxu0 %vm55_vm1, %v17_v7 }
   0x7   :  { %v35_v14 = vrot.slane %v22_v11, %v34_v10  ;;  %v27_v15 = vrot.slane %v22_v11, %v26_v12  ;;  %v31_v16 = vrot.slane %v22_v11, %v30_v13 }
  0xd9   :  { %v136_v17 = vpop.f32.mrb[0].mxu1  ;;  %v93_v19 = vpop.f32.mrb[0].mxu0 }
  0xda   :  { %v137_v18 = vadd.f32 %v136_v17, %v35_v14  ;;  %v164_v20 = vpop.f32.mrb[1].mxu1  ;;  %v94_v21 = vadd.f32 %v93_v19, %v27_v15  ;;  %v95_v22 = vpop.f32.mrb[1].mxu0 }
  0xdb   :  { %v139_v23 = vpop.f32.mrb[2].mxu1  ;;  %v96_v24 = vadd.f32 %v95_v22, %v31_v16  ;;  %v97_v26 = vpop.f32.mrb[2].mxu0 }
  0xdc   :  { %145 = vst [vmem:[%s235_s3 + $0x10] sm:$0xff] %v137_v18  ;;  %v140_v25 = vadd.f32 %v139_v23, %v35_v14  ;;  %v165_v27 = vpop.f32.mrb[3].mxu1  ;;  %143 = vst [vmem:[%s235_s3] sm:$0xff] %v94_v21  ;;  %v98_v28 = vadd.f32 %v97_v26, %v27_v15  ;;  %v99_v29 = vpop.f32.mrb[3].mxu0 }
  0xdd   :  { %144 = vst [vmem:[%s235_s3 + $0x8] sm:$0xff] %v96_v24  ;;  %v100_v30 = vadd.f32 %v99_v29, %v31_v16 }
  0xde   :  { %148 = vst [vmem:[%s235_s3 + $0x28] sm:$0xff] %v140_v25  ;;  %146 = vst [vmem:[%s235_s3 + $0x18] sm:$0xff] %v98_v28 }
  0xdf   :  { %147 = vst [vmem:[%s235_s3 + $0x20] sm:$0xff] %v100_v30 }

// kernel: sequence_predictor_forward.7
= control target key start
LH: loop header
LB: loop body
LE: loop exit
PB: predicated region body
PF: predicated region fallthrough
CT: control target
= control target key end

     0   :  { %v384_v0 = vmov 0.0   ;;  %vm385_vm0 = vmmov 0   ;;  %v386_v3 = vmov 0   ;;  %v51_v27 = vlaneseq  ;;  %s503_s1 = inlined_call_operand.vmem [shape: bf16[128,384], index: 1, kind: input, shape index: {}]   ;;  %s504_s0 = inlined_call_operand.vmem [shape: bf16[16,128], index: 0, kind: input, shape index: {}]   ;;  %s505_s2 = inlined_call_operand.vmem [shape: f32[1,384], index: 2, kind: input, shape index: {}]   ;;  %s506_s3 = inlined_call_operand.vmem [shape: f32[16,384], index: 3, kind: output, shape index: {}]  }
   0x1   :  { %328 = vmatprep.subr.bf16.mxu1 %v384_v0  ;;  %v351_v1 = vld [vmem:[%s503_s1 + $0x4] ss:$12 sps:$4 sm:$0xff]   ;;  %344 = vmatprep.mubr.msk.bf16.mxu1 %vm385_vm0, %v384_v0  ;;  %v353_v2 = vld [vmem:[%s503_s1 + $0x8] ss:$12 sps:$4 sm:$0xff]   ;;  %v354_v4 = vld [vmem:[%s503_s1] ss:$12 sps:$4 sm:$0xff]  }
   0x2   :  { %232 = vmatprep.mubr.bf16.mxu0 %v386_v3  ;;  %200 = vmatprep.subr.bf16.mxu0 %v351_v1  ;;  %v355_v5 = vld [vmem:[%s503_s1 + $0x1c] ss:$12 sps:$4 sm:$0xff]   ;;  %v357_v6 = vld [vmem:[%s503_s1 + $0x20] ss:$12 sps:$4 sm:$0xff]   ;;  %v358_v7 = vld [vmem:[%s503_s1 + $0x18] ss:$12 sps:$4 sm:$0xff]  }
   0x3   :  { %329 = vmatpush3.bf16.msra.mxu1 %v353_v2  ;;  %201 = vmatpush1.bf16.msra.mxu0 %v354_v4  ;;  %v359_v8 = vld [vmem:[%s503_s1 + $0x34] ss:$12 sps:$4 sm:$0xff]   ;;  %v361_v9 = vld [vmem:[%s503_s1 + $0x38] ss:$12 sps:$4 sm:$0xff]   ;;  %v362_v10 = vld [vmem:[%s503_s1 + $0x30] ss:$12 sps:$4 sm:$0xff]  }
   0x4   :  { %330 = vmatprep.subr.bf16.mxu1 %v384_v0  ;;  %202 = vmatprep.subr.bf16.mxu0 %v355_v5  ;;  %v363_v11 = vld [vmem:[%s503_s1 + $0x4c] ss:$12 sps:$4 sm:$0xff]   ;;  %v365_v12 = vld [vmem:[%s503_s1 + $0x50] ss:$12 sps:$4 sm:$0xff]   ;;  %v366_v13 = vld [vmem:[%s503_s1 + $0x48] ss:$12 sps:$4 sm:$0xff]  }
   0x5   :  { %v367_v14 = vld [vmem:[%s503_s1 + $0x64] ss:$12 sps:$4 sm:$0xff]   ;;  %v369_v15 = vld [vmem:[%s503_s1 + $0x68] ss:$12 sps:$4 sm:$0xff]   ;;  %v370_v16 = vld [vmem:[%s503_s1 + $0x60] ss:$12 sps:$4 sm:$0xff]  }
   0x6   :  { %v371_v17 = vld [vmem:[%s503_s1 + $0x7c] ss:$12 sps:$4 sm:$0xff]   ;;  %v373_v18 = vld [vmem:[%s503_s1 + $0x80] ss:$12 sps:$4 sm:$0xff]   ;;  %v374_v19 = vld [vmem:[%s503_s1 + $0x78] ss:$12 sps:$4 sm:$0xff]  }
   0x7   :  { %331 = vmatpush3.bf16.msra.mxu1 %v357_v6  ;;  %203 = vmatpush1.bf16.msra.mxu0 %v358_v7  ;;  %v375_v20 = vld [vmem:[%s503_s1 + $0x94] ss:$12 sps:$4 sm:$0xff]   ;;  %v377_v21 = vld [vmem:[%s503_s1 + $0x98] ss:$12 sps:$4 sm:$0xff]   ;;  %v378_v22 = vld [vmem:[%s503_s1 + $0x90] ss:$12 sps:$4 sm:$0xff]  }
   0x8   :  { %332 = vmatprep.subr.bf16.mxu1 %v384_v0  ;;  %204 = vmatprep.subr.bf16.mxu0 %v359_v8  ;;  %v379_v23 = vld [vmem:[%s503_s1 + $0xac] ss:$12 sps:$4 sm:$0xff]   ;;  %v381_v24 = vld [vmem:[%s503_s1 + $0xb0] ss:$12 sps:$4 sm:$0xff]   ;;  %v382_v25 = vld [vmem:[%s503_s1 + $0xa8] ss:$12 sps:$4 sm:$0xff]  }
   0x9   :  { %v383_v26 = vld [vmem:[%s504_s0] sm:$0xff]   ;;  %v52_v28 = vshrl.u32 %v51_v27, 7 }
   0xa   :  { %v49_v30 = vld [vmem:[%s505_s2] sm:$0x7] }
   0xb   :  { %333 = vmatpush3.bf16.msra.mxu1 %v361_v9  ;;  %205 = vmatpush1.bf16.msra.mxu0 %v362_v10  ;;  %v61_v29 = vsub.s32 2, %v52_v28  ;;  %v53_v31 = vsub.s32 0, %v52_v28  ;;  %v57_v32 = vsub.s32 1, %v52_v28 }
   0xc   :  { %334 = vmatprep.subr.bf16.mxu1 %v384_v0  ;;  %206 = vmatprep.subr.bf16.mxu0 %v363_v11 }
   0xd   :  { %v62_v33 = vrot.slane %v49_v30, %v61_v29  ;;  %v54_v34 = vrot.slane %v49_v30, %v53_v31  ;;  %v58_v35 = vrot.slane %v49_v30, %v57_v32 }
   0xf   :  { %335 = vmatpush3.bf16.msra.mxu1 %v365_v12  ;;  %207 = vmatpush1.bf16.msra.mxu0 %v366_v13 }
  0x10   :  { %336 = vmatprep.subr.bf16.mxu1 %v384_v0  ;;  %208 = vmatprep.subr.bf16.mxu0 %v367_v14 }
  0x13   :  { %337 = vmatpush3.bf16.msra.mxu1 %v369_v15  ;;  %209 = vmatpush1.bf16.msra.mxu0 %v370_v16 }
  0x14   :  { %338 = vmatprep.subr.bf16.mxu1 %v384_v0  ;;  %210 = vmatprep.subr.bf16.mxu0 %v371_v17 }
  0x17   :  { %339 = vmatpush3.bf16.msra.mxu1 %v373_v18  ;;  %211 = vmatpush1.bf16.msra.mxu0 %v374_v19 }
  0x18   :  { %340 = vmatprep.subr.bf16.mxu1 %v384_v0  ;;  %212 = vmatprep.subr.bf16.mxu0 %v375_v20 }
  0x1b   :  { %341 = vmatpush3.bf16.msra.mxu1 %v377_v21  ;;  %213 = vmatpush1.bf16.msra.mxu0 %v378_v22 }
  0x1c   :  { %342 = vmatprep.subr.bf16.mxu1 %v384_v0  ;;  %214 = vmatprep.subr.bf16.mxu0 %v379_v23 }
  0x1f   :  { %343 = vmatpush3.bf16.msra.mxu1 %v381_v24  ;;  %215 = vmatpush1.bf16.msra.mxu0 %v382_v25 }
  0x22   :  { %345 = vmatmul.mubr.bf16.vlgmr.msra.gmra.mrb[0].mxu1 %v383_v26  ;;  %233 = vmatmul.mubr.bf16.vlgmr.msra.gmra.mrb[0].mxu0 %v383_v26 }
  0xf5   :  { %v277_v36 = vpop.f32.mrb[0].mxu1  ;;  %v234_v38 = vpop.f32.mrb[0].mxu0 }
  0xf6   :  { %v278_v37 = vadd.f32 %v277_v36, %v62_v33  ;;  %v346_v39 = vpop.f32.mrb[1].mxu1  ;;  %v235_v40 = vadd.f32 %v234_v38, %v54_v34  ;;  %v236_v41 = vpop.f32.mrb[1].mxu0 }
  0xf7   :  { %v280_v42 = vpop.f32.mrb[2].mxu1  ;;  %v237_v43 = vadd.f32 %v236_v41, %v58_v35  ;;  %v238_v45 = vpop.f32.mrb[2].mxu0 }
  0xf8   :  { %286 = vst [vmem:[%s506_s3 + $0x10] sm:$0xff] %v278_v37  ;;  %v281_v44 = vadd.f32 %v280_v42, %v62_v33  ;;  %v347_v46 = vpop.f32.mrb[3].mxu1  ;;  %284 = vst [vmem:[%s506_s3] sm:$0xff] %v235_v40  ;;  %v239_v47 = vadd.f32 %v238_v45, %v54_v34  ;;  %v240_v48 = vpop.f32.mrb[3].mxu0 }
  0xf9   :  { %285 = vst [vmem:[%s506_s3 + $0x8] sm:$0xff] %v237_v43  ;;  %v241_v49 = vadd.f32 %v240_v48, %v58_v35 }
  0xfa   :  { %289 = vst [vmem:[%s506_s3 + $0x28] sm:$0xff] %v281_v44  ;;  %287 = vst [vmem:[%s506_s3 + $0x18] sm:$0xff] %v239_v47 }
  0xfb   :  { %288 = vst [vmem:[%s506_s3 + $0x20] sm:$0xff] %v241_v49 }

// kernel: sequence_predictor_forward.6
= control target key start
LH: loop header
LB: loop body
LE: loop exit
PB: predicated region body
PF: predicated region fallthrough
CT: control target
= control target key end

     0   :  { %s1139_s12 = smov 0   ;;  %s1464_s0 = inlined_call_operand.vmem [shape: f32[8,2,384], index: 0, kind: input, shape index: {}]   ;;  %s1465_s1 = inlined_call_operand.vmem [shape: bf16[128,384], index: 1, kind: input, shape index: {}]   ;;  %s1466_s2 = inlined_call_operand.vmem [shape: f32[1,384], index: 2, kind: input, shape index: {}]   ;;  %s1467_s3 = inlined_call_operand.vmem [shape: bf16[8,2,128], index: 3, kind: output, shape index: {}]  }
   0x1 LB: > { %s857_s13 = sadd.s32 4294967295, %s1113_s12   ;;  %p861_p0 = scmp.ge.s32.totalorder %s1113_s12, 1  ;;  %s1113_s12 = sphi %s1139_s12, %s13_s12  }
   0x2   : > { %p139_p1 = scmp.lt.s32.totalorder %s1113_s12, 3 }
   0x4   : > { %p140_p2 = pnand %p861_p0, %p139_p1 }
   0x5   : > { %s862_s14 = sshll.u32 (!%p140_p2), %s857_s13, 2  ;;  %p865_p4 = scmp.ne.s32.totalorder (!%p140_p2), %s857_s13, 0 }
   0x6   : > { %143 = sbr.rel (%p140_p2) target bundleno = 1107 (0x453), region = 32  ;;  %p164_p3 = scmp.lt.s32.totalorder (!%p140_p2), %s862_s14, 7 }
   0xd   : > { %s1469_s14 = smov (!%p164_p3, %s862_s14), 7  ;;  %179 = sbr.rel (%p865_p4) target bundleno = 20 (0x14), region = 36 }
   0xe   : > { %s1022_s15 = smul.u32 6, %s1469_s14  ;;  %s1150_s18 = scalar_lea.vmem %s1467_s3, %s1469_s14  ;;  %v1115_v0 = vmov (!%p865_p4), 0.0  }
   0xf   : > { %180 = vst [vmem:[#allocation2] sm:$0x3] (!%p865_p4), %v1115_v0 }
  0x10   : > { %s1155_s21 = scalar_lea.vmem %s1464_s0, %s1022_s15 }
  0x14 PF: > { %v1160_v1 = vld [vmem:[%s1465_s1 + $0x4] ss:$12 sps:$4 sm:$0xff]   ;;  %v1165_v2 = vld [vmem:[%s1465_s1] ss:$12 sps:$4 sm:$0xff]   ;;  %v1116_v3 = vmov 0.0   ;;  %v1117_v4 = vmov 0   ;;  %v215_v29 = vlaneseq }
  0x15   : > { %942 = vmatprep.subr.bf16.mxu1 %v1116_v3  ;;  %393 = vmatprep.mubr.bf16.mxu0 %v1117_v4  ;;  %v1173_v5 = vld [vmem:[%s1465_s1 + $0x1c] ss:$12 sps:$4 sm:$0xff]   ;;  %vm1118_vm0 = vmmov 0   ;;  %v1181_v6 = vld [vmem:[%s1465_s1 + $0x18] ss:$12 sps:$4 sm:$0xff]  }
  0x16   : > { %361 = vmatprep.subr.bf16.mxu0 %v1160_v1  ;;  %958 = vmatprep.mubr.msk.bf16.mxu1 %vm1118_vm0, %v1116_v3  ;;  %v1187_v7 = vld [vmem:[%s1465_s1 + $0x34] ss:$12 sps:$4 sm:$0xff]   ;;  %v1193_v8 = vld [vmem:[%s1465_s1 + $0x30] ss:$12 sps:$4 sm:$0xff]   ;;  %v1199_v9 = vld [vmem:[%s1465_s1 + $0x4c] ss:$12 sps:$4 sm:$0xff]  }
  0x17   : > { %362 = vmatpush1.bf16.msra.mxu0 %v1165_v2  ;;  %v1204_v10 = vld [vmem:[%s1465_s1 + $0x8] ss:$12 sps:$4 sm:$0xff]   ;;  %v1216_v12 = vld [vmem:[%s1465_s1 + $0x64] ss:$12 sps:$4 sm:$0xff]   ;;  %v1222_v13 = vld [vmem:[%s1465_s1 + $0x20] ss:$12 sps:$4 sm:$0xff]  }
  0x18   : > { %363 = vmatprep.subr.bf16.mxu0 %v1173_v5  ;;  %v1210_v11 = vld [vmem:[%s1465_s1 + $0x48] ss:$12 sps:$4 sm:$0xff]   ;;  %943 = vmatpush3.bf16.msra.mxu1 %v1204_v10  ;;  %v1228_v14 = vld [vmem:[%s1465_s1 + $0x60] ss:$12 sps:$4 sm:$0xff]   ;;  %v1241_v16 = vld [vmem:[%s1465_s1 + $0x38] ss:$12 sps:$4 sm:$0xff]  }
  0x19   : > { %944 = vmatprep.subr.bf16.mxu1 %v1116_v3  ;;  %v1234_v15 = vld [vmem:[%s1465_s1 + $0x7c] ss:$12 sps:$4 sm:$0xff]   ;;  %v1248_v17 = vld [vmem:[%s1465_s1 + $0x78] ss:$12 sps:$4 sm:$0xff]   ;;  %v1254_v18 = vld [vmem:[%s1465_s1 + $0x94] ss:$12 sps:$4 sm:$0xff]  }
  0x1a   : > { %v1260_v19 = vld [vmem:[%s1465_s1 + $0x50] ss:$12 sps:$4 sm:$0xff]   ;;  %v1273_v21 = vld [vmem:[%s1465_s1 + $0xac] ss:$12 sps:$4 sm:$0xff]   ;;  %v1279_v22 = vld [vmem:[%s1465_s1 + $0x68] ss:$12 sps:$4 sm:$0xff]  }
  0x1b   : > { %364 = vmatpush1.bf16.msra.mxu0 %v1181_v6  ;;  %v1267_v20 = vld [vmem:[%s1465_s1 + $0x90] ss:$12 sps:$4 sm:$0xff]   ;;  %v1286_v23 = vld [vmem:[%s1465_s1 + $0xa8] ss:$12 sps:$4 sm:$0xff]   ;;  %v1288_v24 = vld [vmem:[#allocation2] sm:$0x3] }
  0x1c   : > { %365 = vmatprep.subr.bf16.mxu0 %v1187_v7  ;;  %945 = vmatpush3.bf16.msra.mxu1 %v1222_v13  ;;  %v1295_v25 = vld [vmem:[%s1465_s1 + $0x80] ss:$12 sps:$4 sm:$0xff]   ;;  %v232_v26 = vpack.c.bf16 %v1288_v24, %v1288_v24  ;;  %v1305_v27 = vld [vmem:[%s1465_s1 + $0x98] ss:$12 sps:$4 sm:$0xff]   ;;  %v1315_v28 = vld [vmem:[%s1465_s1 + $0xb0] ss:$12 sps:$4 sm:$0xff]  }
  0x1d   : > { %946 = vmatprep.subr.bf16.mxu1 %v1116_v3  ;;  %v216_v30 = vshrl.u32 %v215_v29, 7  ;;  %v213_v32 = vld [vmem:[%s1466_s2] sm:$0x7] }
  0x1e   : > { %v231_v36 = vld [vmem:[%s1155_s21] sm:$0x3f] }
  0x1f   : > { %366 = vmatpush1.bf16.msra.mxu0 %v1193_v8  ;;  %v217_v31 = vsub.s32 0, %v216_v30  ;;  %v221_v33 = vsub.s32 1, %v216_v30  ;;  %v450_v41 = vrot.slane %v231_v36, 2  ;;  %v225_v54 = vsub.s32 2, %v216_v30 }
  0x20   : > { %367 = vmatprep.subr.bf16.mxu0 %v1199_v9  ;;  %947 = vmatpush3.bf16.msra.mxu1 %v1241_v16  ;;  %v460_v59 = vrot.slane %v231_v36, 4 }
  0x21   : > { %948 = vmatprep.subr.bf16.mxu1 %v1116_v3  ;;  %v1356_v34 = vrot.slane %v213_v32, %v217_v31  ;;  %v1358_v35 = vrot.slane %v213_v32, %v221_v33  ;;  %v1363_v55 = vrot.slane %v213_v32, %v225_v54 }
  0x23   : > { %368 = vmatpush1.bf16.msra.mxu0 %v1210_v11 }
  0x24   : > { %369 = vmatprep.subr.bf16.mxu0 %v1216_v12  ;;  %949 = vmatpush3.bf16.msra.mxu1 %v1260_v19 }
  0x25   : > { %950 = vmatprep.subr.bf16.mxu1 %v1116_v3 }
  0x27   : > { %370 = vmatpush1.bf16.msra.mxu0 %v1228_v14 }
  0x28   : > { %371 = vmatprep.subr.bf16.mxu0 %v1234_v15  ;;  %951 = vmatpush3.bf16.msra.mxu1 %v1279_v22 }
  0x29   : > { %952 = vmatprep.subr.bf16.mxu1 %v1116_v3 }
  0x2b   : > { %372 = vmatpush1.bf16.msra.mxu0 %v1248_v17 }
  0x2c   : > { %373 = vmatprep.subr.bf16.mxu0 %v1254_v18  ;;  %953 = vmatpush3.bf16.msra.mxu1 %v1295_v25 }
  0x2d   : > { %954 = vmatprep.subr.bf16.mxu1 %v1116_v3 }
  0x2f   : > { %374 = vmatpush1.bf16.msra.mxu0 %v1267_v20 }
  0x30   : > { %375 = vmatprep.subr.bf16.mxu0 %v1273_v21  ;;  %955 = vmatpush3.bf16.msra.mxu1 %v1305_v27 }
  0x31   : > { %956 = vmatprep.subr.bf16.mxu1 %v1116_v3 }
  0x33   : > { %376 = vmatpush1.bf16.msra.mxu0 %v1286_v23 }
  0x34   : > { %472 = vmatprep.subr.bf16.mxu0 %v1160_v1  ;;  %957 = vmatpush3.bf16.msra.mxu1 %v1315_v28 }
  0x35   : > { %962 = vmatprep.subr.bf16.mxu1 %v1116_v3 }
  0x36   : > { %394 = vmatmul.mubr.bf16.vlgmr.msra.gmra.mrb[0].mxu0 %v232_v26 }
  0x37   : > { %473 = vmatpush1.bf16.msra.mxu0 %v1165_v2  ;;  %504 = vmatprep.mubr.bf16.mxu0 %v1117_v4 }
  0x38   : > { %474 = vmatprep.subr.bf16.mxu0 %v1173_v5  ;;  %959 = vmatmul.mubr.bf16.vlgmr.msra.gmra.mrb[0].mxu1 %v232_v26 }
  0x39   : > { %963 = vmatpush3.bf16.msra.mxu1 %v1204_v10  ;;  %978 = vmatprep.mubr.msk.bf16.mxu1 %vm1118_vm0, %v1116_v3 }
  0x3a   : > { %964 = vmatprep.subr.bf16.mxu1 %v1116_v3 }
  0x3b   : > { %475 = vmatpush1.bf16.msra.mxu0 %v1181_v6 }
  0x3c   : > { %476 = vmatprep.subr.bf16.mxu0 %v1187_v7 }
  0x3d   : > { %965 = vmatpush3.bf16.msra.mxu1 %v1222_v13 }
  0x3e   : > { %966 = vmatprep.subr.bf16.mxu1 %v1116_v3 }
  0x3f   : > { %477 = vmatpush1.bf16.msra.mxu0 %v1193_v8 }
  0x40   : > { %478 = vmatprep.subr.bf16.mxu0 %v1199_v9 }
  0x41   : > { %967 = vmatpush3.bf16.msra.mxu1 %v1241_v16 }
  0x42   : > { %968 = vmatprep.subr.bf16.mxu1 %v1116_v3 }
  0x43   : > { %479 = vmatpush1.bf16.msra.mxu0 %v1210_v11 }
  0x44   : > { %480 = vmatprep.subr.bf16.mxu0 %v1216_v12 }
  0x45   : > { %969 = vmatpush3.bf16.msra.mxu1 %v1260_v19 }
  0x46   : > { %970 = vmatprep.subr.bf16.mxu1 %v1116_v3 }
  0x47   : > { %481 = vmatpush1.bf16.msra.mxu0 %v1228_v14 }
  0x48   : > { %482 = vmatprep.subr.bf16.mxu0 %v1234_v15 }
  0x49   : > { %971 = vmatpush3.bf16.msra.mxu1 %v1279_v22 }
  0x4a   : > { %972 = vmatprep.subr.bf16.mxu1 %v1116_v3 }
  0x4b   : > { %483 = vmatpush1.bf16.msra.mxu0 %v1248_v17 }
  0x4c   : > { %484 = vmatprep.subr.bf16.mxu0 %v1254_v18 }
  0x4d   : > { %973 = vmatpush3.bf16.msra.mxu1 %v1295_v25 }
  0x4e   : > { %974 = vmatprep.subr.bf16.mxu1 %v1116_v3 }
  0x4f   : > { %485 = vmatpush1.bf16.msra.mxu0 %v1267_v20 }
  0x50   : > { %486 = vmatprep.subr.bf16.mxu0 %v1273_v21 }
  0x51   : > { %975 = vmatpush3.bf16.msra.mxu1 %v1305_v27 }
  0x52   : > { %976 = vmatprep.subr.bf16.mxu1 %v1116_v3 }
  0x53   : > { %487 = vmatpush1.bf16.msra.mxu0 %v1286_v23 }
  0x54   : > { %584 = vmatprep.subr.bf16.mxu0 %v1160_v1 }
  0x55   : > { %977 = vmatpush3.bf16.msra.mxu1 %v1315_v28 }
  0x56   : > { %982 = vmatprep.subr.bf16.mxu1 %v1116_v3 }
 0x109   : > { %v395_v37 = vpop.f32.mrb[0].mxu0 }
 0x10a   : > { %v396_v38 = vadd.f32 %v395_v37, %v1356_v34  ;;  %v397_v39 = vpop.f32.mrb[1].mxu0 }
 0x10b   : > { %v398_v40 = vadd.f32 %v397_v39, %v1358_v35  ;;  %v399_v42 = vpop.f32.mrb[2].mxu0  ;;  %v436_v47 = vpop.f32.mrb[0].mxu1 }
 0x10c   : > { %v442_v43 = vadd.f32 %v396_v38, %v231_v36  ;;  %v400_v44 = vpop.f32.mrb[3].mxu0  ;;  %v960_v49 = vpop.f32.mrb[1].mxu1  ;;  %v437_v58 = vadd.f32 %v436_v47, %v1363_v55 }
 0x10d   : > { %v452_v46 = vadd.f32 %v450_v41, %v398_v40  ;;  %v439_v50 = vpop.f32.mrb[2].mxu1 }
 0x10e   : > { %v890_v45 = vmul.f32 -1.442695, %v442_v43  ;;  %v961_v51 = vpop.f32.mrb[3].mxu1 }
 0x10f   : > { %v891_v48 = vmul.f32 -1.442695, %v452_v46 }
 0x110   : > { %1067 = vpow2.f32 %v890_v45 }
 0x111   : > { %1069 = vpow2.f32 %v891_v48 }
 0x11a   : > { %v1068_v52 = vpop.eup %1067 }
 0x11b   : > { %v446_v53 = vadd.f32 1.0, %v1068_v52  ;;  %v1070_v56 = vpop.eup %1069 }
 0x11c   : > { %v456_v57 = vadd.f32 1.0, %v1070_v56 }
 0x11d   : > { %1071 = vrcp.f32 %v446_v53 }
 0x11e   : > { %1073 = vrcp.f32 %v456_v57 }
 0x127   : > { %v1072_v60 = vpop.eup %1071 }
 0x128   : > { %v459_v61 = vmul.f32 %v1072_v60, %v437_v58  ;;  %v1074_v63 = vpop.eup %1073 }
 0x129   : > { %v464_v0 = vsub.f32 1.0, %v1074_v63  ;;  %v466_v30 = vmul.f32 %v1074_v63, %v1288_v24  ;;  %v892_v24 = vld [vmem:[%s1155_s21 + $0x6] sm:$0x3f] }
 0x12a   : > { %v462_v62 = vadd.f32 %v460_v59, %v459_v61  ;;  %v561_v41 = vrot.slane %v892_v24, 2  ;;  %v571_v54 = vrot.slane %v892_v24, 4 }
 0x12c   : > { %1075 = vtanh.f32 %v462_v62 }
 0x136   : > { %v1076_v26 = vpop.eup %1075 }
 0x137   : > { %v465_v29 = vmul.f32 %v1076_v26, %v464_v0 }
 0x139   : > { %v1367_v31 = vadd.f32 %v466_v30, %v465_v29 }
 0x13b   : > { %v468_v32 = vpack.c.bf16 %v1367_v31, %v1367_v31 }
 0x13d   : > { %469 = vst [vmem:[%s1150_s18] sm:$0x1] %v468_v32  ;;  %505 = vmatmul.mubr.bf16.vlgmr.msra.gmra.mrb[4].mxu0 %v468_v32  ;;  %979 = vmatmul.mubr.bf16.vlgmr.msra.gmra.mrb[4].mxu1 %v468_v32 }
 0x13e   : > { %585 = vmatpush1.bf16.msra.mxu0 %v1165_v2  ;;  %983 = vmatpush3.bf16.msra.mxu1 %v1204_v10 }
 0x13f   : > { %586 = vmatprep.subr.bf16.mxu0 %v1173_v5  ;;  %984 = vmatprep.subr.bf16.mxu1 %v1116_v3 }
 0x140   : > { %616 = vmatprep.mubr.bf16.mxu0 %v1117_v4  ;;  %998 = vmatprep.mubr.msk.bf16.mxu1 %vm1118_vm0, %v1116_v3 }
 0x142   : > { %587 = vmatpush1.bf16.msra.mxu0 %v1181_v6  ;;  %985 = vmatpush3.bf16.msra.mxu1 %v1222_v13 }
 0x143   : > { %588 = vmatprep.subr.bf16.mxu0 %v1187_v7  ;;  %986 = vmatprep.subr.bf16.mxu1 %v1116_v3 }
 0x146   : > { %589 = vmatpush1.bf16.msra.mxu0 %v1193_v8  ;;  %987 = vmatpush3.bf16.msra.mxu1 %v1241_v16 }
 0x147   : > { %590 = vmatprep.subr.bf16.mxu0 %v1199_v9  ;;  %988 = vmatprep.subr.bf16.mxu1 %v1116_v3 }
 0x14a   : > { %591 = vmatpush1.bf16.msra.mxu0 %v1210_v11  ;;  %989 = vmatpush3.bf16.msra.mxu1 %v1260_v19 }
 0x14b   : > { %592 = vmatprep.subr.bf16.mxu0 %v1216_v12  ;;  %990 = vmatprep.subr.bf16.mxu1 %v1116_v3 }
 0x14e   : > { %593 = vmatpush1.bf16.msra.mxu0 %v1228_v14  ;;  %991 = vmatpush3.bf16.msra.mxu1 %v1279_v22 }
 0x14f   : > { %594 = vmatprep.subr.bf16.mxu0 %v1234_v15  ;;  %992 = vmatprep.subr.bf16.mxu1 %v1116_v3 }
 0x152   : > { %595 = vmatpush1.bf16.msra.mxu0 %v1248_v17  ;;  %993 = vmatpush3.bf16.msra.mxu1 %v1295_v25 }
 0x153   : > { %596 = vmatprep.subr.bf16.mxu0 %v1254_v18  ;;  %994 = vmatprep.subr.bf16.mxu1 %v1116_v3 }
 0x156   : > { %597 = vmatpush1.bf16.msra.mxu0 %v1267_v20  ;;  %995 = vmatpush3.bf16.msra.mxu1 %v1305_v27 }
 0x157   : > { %598 = vmatprep.subr.bf16.mxu0 %v1273_v21  ;;  %996 = vmatprep.subr.bf16.mxu1 %v1116_v3 }
 0x15a   : > { %599 = vmatpush1.bf16.msra.mxu0 %v1286_v23  ;;  %997 = vmatpush3.bf16.msra.mxu1 %v1315_v28 }
 0x15b   : > { %696 = vmatprep.subr.bf16.mxu0 %v1160_v1  ;;  %1002 = vmatprep.subr.bf16.mxu1 %v1116_v3 }
 0x210   : > { %v506_v33 = vpop.f32.mrb[4].mxu0  ;;  %v547_v36 = vpop.f32.mrb[4].mxu1 }
 0x211   : > { %v507_v37 = vadd.f32 %v506_v33, %v1356_v34  ;;  %v508_v38 = vpop.f32.mrb[5].mxu0  ;;  %v980_v39 = vpop.f32.mrb[5].mxu1  ;;  %v548_v53 = vadd.f32 %v547_v36, %v1363_v55 }
 0x212   : > { %v509_v40 = vadd.f32 %v508_v38, %v1358_v35  ;;  %v510_v42 = vpop.f32.mrb[6].mxu0  ;;  %v550_v43 = vpop.f32.mrb[6].mxu1 }
 0x213   : > { %v553_v44 = vadd.f32 %v892_v24, %v507_v37  ;;  %v511_v45 = vpop.f32.mrb[7].mxu0  ;;  %v981_v46 = vpop.f32.mrb[7].mxu1  ;;  %v900_v37 = vld [vmem:[%s1155_s21 + $0x12] sm:$0x3f] }
 0x214   : > { %v563_v48 = vadd.f32 %v561_v41, %v509_v40 }
 0x215   : > { %v893_v47 = vmul.f32 -1.442695, %v553_v44  ;;  %v785_v44 = vrot.slane %v900_v37, 2 }
 0x216   : > { %v894_v1 = vmul.f32 -1.442695, %v563_v48 }
 0x217   : > { %1077 = vpow2.f32 %v893_v47 }
 0x218   : > { %1079 = vpow2.f32 %v894_v1 }
 0x221   : > { %v1078_v49 = vpop.eup %1077 }
 0x222   : > { %v557_v50 = vadd.f32 1.0, %v1078_v49  ;;  %v1080_v51 = vpop.eup %1079 }
 0x223   : > { %v567_v52 = vadd.f32 1.0, %v1080_v51 }
 0x224   : > { %1081 = vrcp.f32 %v557_v50 }
 0x225   : > { %1083 = vrcp.f32 %v567_v52 }
 0x22e   : > { %v1082_v56 = vpop.eup %1081 }
 0x22f   : > { %v570_v57 = vmul.f32 %v1082_v56, %v548_v53  ;;  %v1084_v59 = vpop.eup %1083 }
 0x230   : > { %v575_v60 = vsub.f32 1.0, %v1084_v59  ;;  %v577_v63 = vmul.f32 %v1084_v59, %v1367_v31 }
 0x231   : > { %v573_v58 = vadd.f32 %v571_v54, %v570_v57 }
 0x233   : > { %1085 = vtanh.f32 %v573_v58 }
 0x23d   : > { %v1086_v61 = vpop.eup %1085 }
 0x23e   : > { %v576_v62 = vmul.f32 %v1086_v61, %v575_v60 }
 0x240   : > { %v1412_v0 = vadd.f32 %v577_v63, %v576_v62 }
 0x242   : > { %v579_v26 = vpack.c.bf16 %v1412_v0, %v1412_v0 }
 0x244   : > { %895 = vst [vmem:[%s1150_s18 + $0x1] sm:$0x1] %v579_v26  ;;  %617 = vmatmul.mubr.bf16.vlgmr.msra.gmra.mrb[8].mxu0 %v579_v26  ;;  %999 = vmatmul.mubr.bf16.vlgmr.msra.gmra.mrb[8].mxu1 %v579_v26 }
 0x245   : > { %697 = vmatpush1.bf16.msra.mxu0 %v1165_v2  ;;  %1003 = vmatpush3.bf16.msra.mxu1 %v1204_v10  ;;  %v896_v2 = vld [vmem:[%s1155_s21 + $0xc] sm:$0x3f] }
 0x246   : > { %698 = vmatprep.subr.bf16.mxu0 %v1173_v5  ;;  %1004 = vmatprep.subr.bf16.mxu1 %v1116_v3  ;;  %v673_v10 = vrot.slane %v896_v2, 2 }
 0x247   : > { %728 = vmatprep.mubr.bf16.mxu0 %v1117_v4  ;;  %1018 = vmatprep.mubr.msk.bf16.mxu1 %vm1118_vm0, %v1116_v3 }
 0x249   : > { %699 = vmatpush1.bf16.msra.mxu0 %v1181_v6  ;;  %1005 = vmatpush3.bf16.msra.mxu1 %v1222_v13 }
 0x24a   : > { %700 = vmatprep.subr.bf16.mxu0 %v1187_v7  ;;  %1006 = vmatprep.subr.bf16.mxu1 %v1116_v3 }
 0x24d   : > { %701 = vmatpush1.bf16.msra.mxu0 %v1193_v8  ;;  %1007 = vmatpush3.bf16.msra.mxu1 %v1241_v16 }
 0x24e   : > { %702 = vmatprep.subr.bf16.mxu0 %v1199_v9  ;;  %1008 = vmatprep.subr.bf16.mxu1 %v1116_v3 }
 0x251   : > { %703 = vmatpush1.bf16.msra.mxu0 %v1210_v11  ;;  %1009 = vmatpush3.bf16.msra.mxu1 %v1260_v19 }
 0x252   : > { %704 = vmatprep.subr.bf16.mxu0 %v1216_v12  ;;  %1010 = vmatprep.subr.bf16.mxu1 %v1116_v3 }
 0x255   : > { %705 = vmatpush1.bf16.msra.mxu0 %v1228_v14  ;;  %1011 = vmatpush3.bf16.msra.mxu1 %v1279_v22 }
 0x256   : > { %706 = vmatprep.subr.bf16.mxu0 %v1234_v15  ;;  %1012 = vmatprep.subr.bf16.mxu1 %v1116_v3 }
 0x259   : > { %707 = vmatpush1.bf16.msra.mxu0 %v1248_v17  ;;  %1013 = vmatpush3.bf16.msra.mxu1 %v1295_v25 }
 0x25a   : > { %708 = vmatprep.subr.bf16.mxu0 %v1254_v18  ;;  %1014 = vmatprep.subr.bf16.mxu1 %v1116_v3 }
 0x25d   : > { %709 = vmatpush1.bf16.msra.mxu0 %v1267_v20  ;;  %1015 = vmatpush3.bf16.msra.mxu1 %v1305_v27 }
 0x25e   : > { %710 = vmatprep.subr.bf16.mxu0 %v1273_v21  ;;  %1016 = vmatprep.subr.bf16.mxu1 %v1116_v3 }
 0x261   : > { %711 = vmatpush1.bf16.msra.mxu0 %v1286_v23  ;;  %1017 = vmatpush3.bf16.msra.mxu1 %v1315_v28  ;;  %v683_v23 = vrot.slane %v896_v2, 4 }
 0x317   : > { %v618_v4 = vpop.f32.mrb[8].mxu0  ;;  %v659_v5 = vpop.f32.mrb[8].mxu1 }
 0x318   : > { %v619_v6 = vadd.f32 %v618_v4, %v1356_v34  ;;  %v620_v7 = vpop.f32.mrb[9].mxu0  ;;  %v1000_v8 = vpop.f32.mrb[9].mxu1  ;;  %v660_v22 = vadd.f32 %v659_v5, %v1363_v55 }
 0x319   : > { %v621_v9 = vadd.f32 %v620_v7, %v1358_v35  ;;  %v622_v11 = vpop.f32.mrb[10].mxu0  ;;  %v662_v12 = vpop.f32.mrb[10].mxu1 }
 0x31a   : > { %v665_v13 = vadd.f32 %v896_v2, %v619_v6  ;;  %v623_v14 = vpop.f32.mrb[11].mxu0  ;;  %v1001_v15 = vpop.f32.mrb[11].mxu1 }
 0x31b   : > { %v675_v16 = vadd.f32 %v673_v10, %v621_v9 }
 0x31c   : > { %v897_v3 = vmul.f32 -1.442695, %v665_v13 }
 0x31d   : > { %v898_v17 = vmul.f32 -1.442695, %v675_v16 }
 0x31e   : > { %1087 = vpow2.f32 %v897_v3 }
 0x31f   : > { %1089 = vpow2.f32 %v898_v17 }
 0x328   : > { %v1088_v18 = vpop.eup %1087 }
 0x329   : > { %v669_v19 = vadd.f32 1.0, %v1088_v18  ;;  %v1090_v20 = vpop.eup %1089 }
 0x32a   : > { %v679_v21 = vadd.f32 1.0, %v1090_v20 }
 0x32b   : > { %1091 = vrcp.f32 %v669_v19 }
 0x32c   : > { %1093 = vrcp.f32 %v679_v21 }
 0x335   : > { %v1092_v25 = vpop.eup %1091 }
 0x336   : > { %v682_v27 = vmul.f32 %v1092_v25, %v660_v22  ;;  %v1094_v29 = vpop.eup %1093 }
 0x337   : > { %v687_v30 = vsub.f32 1.0, %v1094_v29  ;;  %v689_v24 = vmul.f32 %v1094_v29, %v1412_v0 }
 0x338   : > { %v685_v28 = vadd.f32 %v683_v23, %v682_v27 }
 0x33a   : > { %1095 = vtanh.f32 %v685_v28 }
 0x344   : > { %v1096_v31 = vpop.eup %1095 }
 0x345   : > { %v688_v32 = vmul.f32 %v1096_v31, %v687_v30 }
 0x347   : > { %v690_v33 = vadd.f32 %v689_v24, %v688_v32 }
 0x349   : > { %v691_v36 = vpack.c.bf16 %v690_v33, %v690_v33 }
 0x34b   : > { %899 = vst [vmem:[%s1150_s18 + $0x2] sm:$0x1] %v691_v36  ;;  %729 = vmatmul.mubr.bf16.vlgmr.msra.gmra.mrb[12].mxu0 %v691_v36  ;;  %1019 = vmatmul.mubr.bf16.vlgmr.msra.gmra.mrb[12].mxu1 %v691_v36 }
 0x41e   : > { %v730_v38 = vpop.f32.mrb[12].mxu0  ;;  %v771_v39 = vpop.f32.mrb[12].mxu1 }
 0x41f   : > { %v731_v40 = vadd.f32 %v730_v38, %v1356_v34  ;;  %v732_v41 = vpop.f32.mrb[13].mxu0  ;;  %v1020_v42 = vpop.f32.mrb[13].mxu1  ;;  %v772_v56 = vadd.f32 %v771_v39, %v1363_v55 }
 0x420   : > { %v733_v43 = vadd.f32 %v732_v41, %v1358_v35  ;;  %v734_v45 = vpop.f32.mrb[14].mxu0  ;;  %v774_v46 = vpop.f32.mrb[14].mxu1  ;;  %v795_v35 = vrot.slane %v900_v37, 4 }
 0x421   : > { %v777_v47 = vadd.f32 %v900_v37, %v731_v40  ;;  %v735_v48 = vpop.f32.mrb[15].mxu0  ;;  %v1021_v1 = vpop.f32.mrb[15].mxu1 }
 0x422   : > { %v787_v50 = vadd.f32 %v785_v44, %v733_v43 }
 0x423   : > { %v901_v49 = vmul.f32 -1.442695, %v777_v47 }
 0x424   : > { %v902_v51 = vmul.f32 -1.442695, %v787_v50 }
 0x425   : > { %1097 = vpow2.f32 %v901_v49 }
 0x426   : > { %1099 = vpow2.f32 %v902_v51 }
 0x42f   : > { %v1098_v52 = vpop.eup %1097 }
 0x430   : > { %v781_v53 = vadd.f32 1.0, %v1098_v52  ;;  %v1100_v54 = vpop.eup %1099 }
 0x431   : > { %v791_v34 = vadd.f32 1.0, %v1100_v54 }
 0x432   : > { %1101 = vrcp.f32 %v781_v53 }
 0x433   : > { %1103 = vrcp.f32 %v791_v34 }
 0x43c   : > { %v1102_v57 = vpop.eup %1101 }
 0x43d   : > { %v794_v58 = vmul.f32 %v1102_v57, %v772_v56  ;;  %v1104_v60 = vpop.eup %1103 }
 0x43e   : > { %v799_v61 = vsub.f32 1.0, %v1104_v60  ;;  %v801_v0 = vmul.f32 %v1104_v60, %v690_v33 }
 0x43f   : > { %v797_v59 = vadd.f32 %v795_v35, %v794_v58 }
 0x441   : > { %1105 = vtanh.f32 %v797_v59 }
 0x44b   : > { %v1106_v62 = vpop.eup %1105 }
 0x44c   : > { %v800_v63 = vmul.f32 %v1106_v62, %v799_v61 }
 0x44e   : > { %v802_v26 = vadd.f32 %v801_v0, %v800_v63 }
 0x450   : > { %v803_v2 = vpack.c.bf16 %v802_v26, %v802_v26  ;;  %806 = vst [vmem:[#allocation2] sm:$0x3] %v802_v26 }
 0x452   : > { %903 = vst [vmem:[%s1150_s18 + $0x3] sm:$0x1] %v803_v2 }
 0x453 PF: > { %s13_s12 = sadd.s32 1, %s1113_s12  }
 0x454   : > { %p10_p5 = scmp.ge.s32.totalorder %s13_s12, 4  }
 0x456   :  { %12 = sbr.rel (!%p10_p5) target bundleno = 1 (0x1), region = 72 }

// kernel: sequence_predictor_forward.9
= control target key start
LH: loop header
LB: loop body
LE: loop exit
PB: predicated region body
PF: predicated region fallthrough
CT: control target
= control target key end

     0   :  { %v231_v1 = vmov 0.0   ;;  %vm232_vm0 = vmmov 0   ;;  %s298_s0 = inlined_call_operand.vmem [shape: bf16[16,128], index: 0, kind: input, shape index: {}]   ;;  %s299_s1 = inlined_call_operand.vmem [shape: bf16[128,128], index: 1, kind: input, shape index: {}]   ;;  %s300_s2 = inlined_call_operand.vmem [shape: f32[1,128], index: 2, kind: input, shape index: {}]   ;;  %s301_s3 = inlined_call_operand.hbm [shape: f32[16,128], index: 3, kind: output, shape index: {}]  }
   0x1   :  { %v198_v0 = vld [vmem:[%s299_s1] sm:$0xff]   ;;  %173 = vmatprep.subr.bf16.mxu0 %v231_v1  ;;  %v199_v2 = vld [vmem:[%s299_s1 + $0x8] sm:$0xff]   ;;  %189 = vmatprep.mubr.msk.bf16.mxu0 %vm232_vm0, %v231_v1  ;;  %v200_v3 = vld [vmem:[%s299_s1 + $0x10] sm:$0xff]  }
   0x2   :  { %174 = vmatpush3.bf16.msra.mxu0 %v198_v0 }
   0x3   :  { %175 = vmatprep.subr.bf16.mxu0 %v231_v1 }
   0x6   :  { %176 = vmatpush3.bf16.msra.mxu0 %v199_v2 }
   0x7   :  { %177 = vmatprep.subr.bf16.mxu0 %v231_v1 }
   0x8   :  { %8 = vsyncpa [#allocation3], 0  ;;  %v201_v4 = vld [vmem:[%s299_s1 + $0x18] sm:$0xff]   ;;  %v202_v5 = vld [vmem:[%s299_s1 + $0x20] sm:$0xff]   ;;  %s233_s5 = smov [#allocation2]  }
   0x9   :  { %v203_v6 = vld [vmem:[%s299_s1 + $0x28] sm:$0xff]   ;;  %v204_v7 = vld [vmem:[%s299_s1 + $0x30] sm:$0xff]   ;;  %v205_v8 = vld [vmem:[%s299_s1 + $0x38] sm:$0xff]   ;;  %s143_s6 = sshll.u32 %s233_s5, 4  ;;  %s144_s6 = int_to_ptr.vmem [resolvable:$true] %s143_s6 }
   0xa   :  { %178 = vmatpush3.bf16.msra.mxu0 %v200_v3  ;;  %v206_v9 = vld [vmem:[%s298_s0] sm:$0xff]   ;;  %s207_s1 = scalar_lea.vmem %s144_s6, 256  ;;  %p212_p1 = scmp.lt.s32.totalorder %s144_s6, %s144_s6 }
   0xb   :  { %179 = vmatprep.subr.bf16.mxu0 %v231_v1  ;;  %v154_v10 = vld [vmem:[%s300_s2] ss:$0 sm:$0xff]  ;;  %p208_p0 = scmp.ne.s32.totalorder %s144_s6, %s207_s1  ;;  %p213_p2 = scmp.lt.s32.totalorder %s207_s1, %s207_s1 }
   0xd   :  { %p214_p3 = por %p213_p2, %p212_p1 }
   0xe   :  { %180 = vmatpush3.bf16.msra.mxu0 %v201_v4 }
   0xf   :  { %181 = vmatprep.subr.bf16.mxu0 %v231_v1  ;;  %p215_p4 = pnand %p214_p3, %p208_p0 }
  0x12   :  { %182 = vmatpush3.bf16.msra.mxu0 %v202_v5 }
  0x13   :  { %183 = vmatprep.subr.bf16.mxu0 %v231_v1 }
  0x16   :  { %184 = vmatpush3.bf16.msra.mxu0 %v203_v6 }
  0x17   :  { %185 = vmatprep.subr.bf16.mxu0 %v231_v1 }
  0x1a   :  { %186 = vmatpush3.bf16.msra.mxu0 %v204_v7 }
  0x1b   :  { %187 = vmatprep.subr.bf16.mxu0 %v231_v1 }
  0x1e   :  { %188 = vmatpush3.bf16.msra.mxu0 %v205_v8 }
  0x21   :  { %190 = vmatmul.mubr.bf16.vlgmr.msra.gmra.mrb[0].mxu0 %v206_v9 }
  0xf4   :  { %v129_v11 = vpop.f32.mrb[0].mxu0 }
  0xf5   :  { %v130_v12 = vadd.f32 %v154_v10, %v129_v11  ;;  %v191_v13 = vpop.f32.mrb[1].mxu0 }
  0xf6   :  { %v132_v14 = vpop.f32.mrb[2].mxu0 }
  0xf7   :  { %136 = vst [vmem:[#allocation2] sm:$0xff] %v130_v12  ;;  %v133_v15 = vadd.f32 %v154_v10, %v132_v14  ;;  %v192_v16 = vpop.f32.mrb[3].mxu0 }
  0xf9   :  { %137 = vst [vmem:[#allocation2 + $0x8] sm:$0xff] %v133_v15 }
  0xfa   :  { %218 = shalt.err (!%p215_p4)
}
  0xfb   :  { %s219_s7 = scalar_lea.hbm %s301_s3, 256 }
  0xfc   :  { %p220_p5 = scmp.ne.s32.totalorder %s301_s3, %s219_s7  ;;  %p223_p6 = scmp.lt.u32.totalorder %s219_s7, %s301_s3 }
  0xfe   :  { %p225_p7 = pnand %p223_p6, %p220_p5 }
 0x100   :  { %228 = shalt.err (!%p225_p7)
}
 0x101   :  { %s234_s12 = smov 128   ;;  %s235_s13 = smov 8  }
 0x102   :  { %149 = dma.vmem_to_hbm [thread:$0]  %s144_s6, 256, %s301_s3, [#allocation3], %s234_s12, %s234_s12, %s235_s13  }
 0x103   :  { %229 = dma.done.wait [#allocation3], 256  }
 0x104   :  { %230 = vsyncadd [#allocation3], 4294967040 }
 0x105   :  { %153 = vsyncpa [#allocation3], 1 }

</bundles_post_ra>
